<compile_context>
chip_gen: v6e
topology: v6e:2x2x1
jax: 0.10.0
libtpu: 0.0.40
codegen_flags: <defaults>
</compile_context>

<pallas_src>
import math
import functools

import jax
import jax.numpy as jnp
from jax import lax
from jax.experimental import pallas as pl
from jax.experimental.pallas import tpu as pltpu

_VMEM_LIMIT = 32 * 1024 * 1024  # safe scoped-VMEM budget on v5e/v6e/v7x


# ---------------------------------------------------------------------------
# In-kernel helpers
# ---------------------------------------------------------------------------
def _layernorm(x, gamma, beta, eps=1e-12):
    # matches torch reference: mean / biased variance over last dim, eps=1e-12
    mean = jnp.mean(x, axis=-1, keepdims=True)
    var = jnp.mean((x - mean) ** 2, axis=-1, keepdims=True)
    return gamma * ((x - mean) * lax.rsqrt(var + eps)) + beta


def _pick_row_tile(n_rows):
    # largest tile (<=512) that divides the row count exactly; fall back to full slab
    for t in (512, 256, 128, 64, 32, 16, 8):
        if n_rows % t == 0:
            return t
    return n_rows


def _pick_head_chunk(n):
    for c in (16, 8, 4, 2, 1):
        if n % c == 0:
            return c
    return n


# ---------------------------------------------------------------------------
# Kernel 1: fused Q/K/V projections  (x @ Wq + bq, x @ Wk + bk, x @ Wv + bv)
# Row-tiled; matmuls on the MXU with f32 accumulation.
# ---------------------------------------------------------------------------
def _qkv_proj_kernel(x_ref, wq_ref, bq_ref, wk_ref, bk_ref, wv_ref, bv_ref,
                     q_ref, k_ref, v_ref):
    x = x_ref[...]                                    # (TM, D)
    q_ref[...] = jnp.dot(x, wq_ref[...], preferred_element_type=jnp.float32) + bq_ref[...]
    k_ref[...] = jnp.dot(x, wk_ref[...], preferred_element_type=jnp.float32) + bk_ref[...]
    v_ref[...] = jnp.dot(x, wv_ref[...], preferred_element_type=jnp.float32) + bv_ref[...]


def qkv_proj(x2, p):
    BL, D = x2.shape
    TM = _pick_row_tile(BL)
    grid = (BL // TM,)

    act_spec = pl.BlockSpec((TM, D), lambda i: (i, 0))
    w_spec = pl.BlockSpec((D, D), lambda i: (0, 0))
    b_spec = pl.BlockSpec((1, D), lambda i: (0, 0))

    flops = 3 * 2 * BL * D * D
    bytes_accessed = 4 * (BL * D + 3 * D * D + 3 * D + 3 * BL * D)

    out_shape = (jax.ShapeDtypeStruct((BL, D), jnp.float32),
                 jax.ShapeDtypeStruct((BL, D), jnp.float32),
                 jax.ShapeDtypeStruct((BL, D), jnp.float32))
    return pl.pallas_call(
        _qkv_proj_kernel,
        out_shape=out_shape,
        grid=grid,
        in_specs=[act_spec, w_spec, b_spec, w_spec, b_spec, w_spec, b_spec],
        out_specs=(act_spec, act_spec, act_spec),
        compiler_params=pltpu.CompilerParams(
            dimension_semantics=("parallel",),
            vmem_limit_bytes=_VMEM_LIMIT),
        cost_estimate=pl.CostEstimate(
            flops=flops, transcendentals=0, bytes_accessed=bytes_accessed),
    )(x2, p["wq"], p["bq"], p["wk"], p["bk"], p["wv"], p["bv"])


# ---------------------------------------------------------------------------
# Kernel 2: scaled-dot-product attention over chunks of (batch*head) rows.
# Scores / output contractions on the MXU; softmax reciprocal on the EUP.
# ---------------------------------------------------------------------------
def _attn_kernel(q_ref, k_ref, v_ref, o_ref, *, scale):
    q = q_ref[...]                                    # (Hc, L, dt)
    k = k_ref[...]                                    # (Hc, L, dt)
    v = v_ref[...]                                    # (Hc, L, dt)

    scores = jnp.einsum('bqd,bkd->bqk', q, k,
                        preferred_element_type=jnp.float32) * scale      # (Hc, L, L)
    m = jnp.max(scores, axis=-1, keepdims=True)
    p = jnp.exp(scores - m)
    denom = jnp.sum(p, axis=-1, keepdims=True)
    probs = p * pl.reciprocal(denom, approx=True)
    o_ref[...] = jnp.einsum('bqk,bkd->bqd', probs, v,
                            preferred_element_type=jnp.float32)          # (Hc, L, dt)


def attention(qf, kf, vf):
    N, L, dt = qf.shape
    scale = 1.0 / math.sqrt(dt)
    Hc = _pick_head_chunk(N)
    grid = (N // Hc,)

    spec = pl.BlockSpec((Hc, L, dt), lambda i: (i, 0, 0))

    flops = N * (2 * L * L * dt * 2 + 4 * L * L)
    transcendentals = N * L * L + N * L
    bytes_accessed = 4 * (4 * N * L * dt)

    return pl.pallas_call(
        functools.partial(_attn_kernel, scale=scale),
        out_shape=jax.ShapeDtypeStruct((N, L, dt), jnp.float32),
        grid=grid,
        in_specs=[spec, spec, spec],
        out_specs=spec,
        compiler_params=pltpu.CompilerParams(
            dimension_semantics=("parallel",),
            vmem_limit_bytes=_VMEM_LIMIT),
        cost_estimate=pl.CostEstimate(
            flops=flops, transcendentals=transcendentals,
            bytes_accessed=bytes_accessed),
    )(qf, kf, vf)


# ---------------------------------------------------------------------------
# Kernel 3: fused  w_concat -> +residual -> LayerNorm1 -> FFN(relu) ->
#                  +residual -> LayerNorm2      (row-tiled, MXU matmuls)
# ---------------------------------------------------------------------------
def _out_ffn_kernel(attn_ref, res_ref, wo_ref, bo_ref, g1_ref, be1_ref,
                    w1_ref, b1_ref, w2_ref, b2_ref, g2_ref, be2_ref, o_ref):
    a = attn_ref[...]                                 # (TM, D) concatenated heads
    res = res_ref[...]                                # (TM, D) residual (layer input)

    # hoisted single reads of the small (1, D)/(1, F) parameter rows
    bo = bo_ref[...]; g1 = g1_ref[...]; be1 = be1_ref[...]
    b1 = b1_ref[...]; b2 = b2_ref[...]; g2 = g2_ref[...]; be2 = be2_ref[...]

    x = jnp.dot(a, wo_ref[...], preferred_element_type=jnp.float32) + bo   # w_concat
    x = x + res                                       # dropout1 = identity (inference)
    x = _layernorm(x, g1, be1)                        # norm1

    res2 = x
    h = jnp.dot(x, w1_ref[...], preferred_element_type=jnp.float32) + b1   # FFN linear1
    h = jnp.maximum(h, 0.0)                           # ReLU (dropout = identity)
    y = jnp.dot(h, w2_ref[...], preferred_element_type=jnp.float32) + b2   # FFN linear2

    x = y + res2                                      # dropout2 = identity
    o_ref[...] = _layernorm(x, g2, be2)               # norm2


def out_ffn(attn2, res2, p):
    BL, D = attn2.shape
    F = p["w1"].shape[1]
    TM = _pick_row_tile(BL)
    grid = (BL // TM,)

    act_spec = pl.BlockSpec((TM, D), lambda i: (i, 0))
    wo_spec = pl.BlockSpec((D, D), lambda i: (0, 0))
    w1_spec = pl.BlockSpec((D, F), lambda i: (0, 0))
    w2_spec = pl.BlockSpec((F, D), lambda i: (0, 0))
    vd_spec = pl.BlockSpec((1, D), lambda i: (0, 0))
    vf_spec = pl.BlockSpec((1, F), lambda i: (0, 0))

    flops = 2 * BL * (D * D + D * F + F * D) + 16 * BL * D
    transcendentals = 2 * BL
    bytes_accessed = 4 * (3 * BL * D + D * D + D * F + F * D + 4 * D + F)

    return pl.pallas_call(
        _out_ffn_kernel,
        out_shape=jax.ShapeDtypeStruct((BL, D), jnp.float32),
        grid=grid,
        in_specs=[act_spec, act_spec,
                  wo_spec, vd_spec, vd_spec, vd_spec,
                  w1_spec, vf_spec, w2_spec, vd_spec, vd_spec, vd_spec],
        out_specs=act_spec,
        compiler_params=pltpu.CompilerParams(
            dimension_semantics=("parallel",),
            vmem_limit_bytes=_VMEM_LIMIT),
        cost_estimate=pl.CostEstimate(
            flops=flops, transcendentals=transcendentals,
            bytes_accessed=bytes_accessed),
    )(attn2, res2, p["wo"], p["bo"], p["gamma1"], p["beta1"],
      p["w1"], p["b1"], p["w2"], p["b2"], p["gamma2"], p["beta2"])


# ---------------------------------------------------------------------------
# Encoder layer / encoder (glue: reshapes + head split/concat stay in plain JAX)
# ---------------------------------------------------------------------------
def encoder_layer(x, p):
    B, L, D = x.shape
    H = p["n_head"]
    dt = D // H

    x2 = x.reshape(B * L, D)

    q2, k2, v2 = qkv_proj(x2, p)

    # Q: reproduce the reference's direct .view(B, n_head, L, d_t) (no transpose).
    q4 = q2.reshape(B, H, L, dt)
    # K, V: the reference's split(): view(B, L, H, d_t).transpose(1, 2)
    k4 = k2.reshape(B, L, H, dt).transpose(0, 2, 1, 3)
    v4 = v2.reshape(B, L, H, dt).transpose(0, 2, 1, 3)

    qf = q4.reshape(B * H, L, dt)
    kf = k4.reshape(B * H, L, dt)
    vf = v4.reshape(B * H, L, dt)

    of = attention(qf, kf, vf)                        # (B*H, L, d_t)

    # concat(): transpose(1,2).view(B, L, D)
    o2 = of.reshape(B, H, L, dt).transpose(0, 2, 1, 3).reshape(B * L, D)

    y2 = out_ffn(o2, x2, p)
    return y2.reshape(B, L, D)


def encoder_forward(x, layer_params):
    for p in layer_params:
        x = encoder_layer(x, p)
    return x


# ---------------------------------------------------------------------------
# Deterministic parameter initialization (synthetic weights)
# ---------------------------------------------------------------------------
def init_params(key, n_layers, d_model, n_head, ffn_hidden):
    layers = []
    for _ in range(n_layers):
        key, *ks = jax.random.split(key, 13)

        def w(k, shape, scale=0.2):
            return scale * jax.random.normal(k, shape, dtype=jnp.float32)

        layers.append(dict(
            n_head=n_head,
            wq=w(ks[0], (d_model, d_model)), bq=w(ks[1], (1, d_model), 0.05),
            wk=w(ks[2], (d_model, d_model)), bk=w(ks[3], (1, d_model), 0.05),
            wv=w(ks[4], (d_model, d_model)), bv=w(ks[5], (1, d_model), 0.05),
            wo=w(ks[6], (d_model, d_model)), bo=w(ks[7], (1, d_model), 0.05),
            w1=w(ks[8], (d_model, ffn_hidden)), b1=w(ks[9], (1, ffn_hidden), 0.05),
            w2=w(ks[10], (ffn_hidden, d_model)), b2=w(ks[11], (1, d_model), 0.05),
            gamma1=jnp.ones((1, d_model), jnp.float32),
            beta1=jnp.zeros((1, d_model), jnp.float32),
            gamma2=jnp.ones((1, d_model), jnp.float32),
            beta2=jnp.zeros((1, d_model), jnp.float32),
        ))
    return layers


if __name__ == "__main__":
    d_model = 2
    n_head = 2
    ffn_hidden = 128
    n_layers = 2
    batch = 4
    seq_len = 8

    key = jax.random.PRNGKey(0)
    kx, kp = jax.random.split(key)
    x = jax.random.normal(kx, (batch, seq_len, d_model), dtype=jnp.float32)
    params = init_params(kp, n_layers, d_model, n_head, ffn_hidden)

    out = encoder_forward(x, params)
    out = jax.block_until_ready(out)

    assert out.shape == (batch, seq_len, d_model)
    assert jnp.all(jnp.isfinite(out))
    print("KERNEL_OK")
</pallas_src>

<mosaic_0001>
module attributes {stable_mosaic.version = 11 : i64} {
  func.func @_qkv_proj_kernel(%arg0: i32, %arg1: memref<32x2xf32, #tpu.memory_space<vmem>>, %arg2: memref<2x2xf32, #tpu.memory_space<vmem>>, %arg3: memref<1x2xf32, #tpu.memory_space<vmem>>, %arg4: memref<2x2xf32, #tpu.memory_space<vmem>>, %arg5: memref<1x2xf32, #tpu.memory_space<vmem>>, %arg6: memref<2x2xf32, #tpu.memory_space<vmem>>, %arg7: memref<1x2xf32, #tpu.memory_space<vmem>>, %arg8: memref<32x2xf32, #tpu.memory_space<vmem>>, %arg9: memref<32x2xf32, #tpu.memory_space<vmem>>, %arg10: memref<32x2xf32, #tpu.memory_space<vmem>>) attributes {dimension_semantics = [#tpu.dimension_semantics<parallel>], iteration_bounds = array<i64: 1>, scalar_prefetch = 0 : i64, scratch_operands = 0 : i64, tpu.core_type = #tpu.core_type<tc>, window_params = [{transform_indices = @transform_0, window_bounds = array<i64: 32, 2>}, {pipeline_mode = #tpu.pipeline_mode<synchronous>, transform_indices = @transform_1, window_bounds = array<i64: 2, 2>}, {pipeline_mode = #tpu.pipeline_mode<synchronous>, transform_indices = @transform_2, window_bounds = array<i64: 1, 2>}, {pipeline_mode = #tpu.pipeline_mode<synchronous>, transform_indices = @transform_3, window_bounds = array<i64: 2, 2>}, {pipeline_mode = #tpu.pipeline_mode<synchronous>, transform_indices = @transform_4, window_bounds = array<i64: 1, 2>}, {pipeline_mode = #tpu.pipeline_mode<synchronous>, transform_indices = @transform_5, window_bounds = array<i64: 2, 2>}, {pipeline_mode = #tpu.pipeline_mode<synchronous>, transform_indices = @transform_6, window_bounds = array<i64: 1, 2>}, {transform_indices = @transform_7, window_bounds = array<i64: 32, 2>}, {transform_indices = @transform_8, window_bounds = array<i64: 32, 2>}, {transform_indices = @transform_9, window_bounds = array<i64: 32, 2>}]} {
    %c0 = arith.constant 0 : index
    %c0_0 = arith.constant 0 : index
    %0 = vector.load %arg1[%c0, %c0_0] : memref<32x2xf32, #tpu.memory_space<vmem>>, vector<32x2xf32>
    %c0_1 = arith.constant 0 : index
    %c0_2 = arith.constant 0 : index
    %1 = vector.load %arg2[%c0_1, %c0_2] : memref<2x2xf32, #tpu.memory_space<vmem>>, vector<2x2xf32>
    %cst = arith.constant dense<0.000000e+00> : vector<32x2xf32>
    %2 = tpu.matmul %0, %1, %cst {dimension_numbers = #tpu.dot_dimension_numbers<[1], [0], [0], [1], [0, 0, 1, 1], [], []>} : vector<32x2xf32>, vector<2x2xf32>, vector<32x2xf32> -> vector<32x2xf32>
    %c0_3 = arith.constant 0 : index
    %c0_4 = arith.constant 0 : index
    %3 = vector.load %arg3[%c0_3, %c0_4] : memref<1x2xf32, #tpu.memory_space<vmem>>, vector<1x2xf32>
    %4 = vector.broadcast %3 : vector<1x2xf32> to vector<32x2xf32>
    %5 = arith.addf %2, %4 : vector<32x2xf32>
    %c0_5 = arith.constant 0 : index
    %c0_6 = arith.constant 0 : index
    %6 = vector.load %arg8[%c0_5, %c0_6] : memref<32x2xf32, #tpu.memory_space<vmem>>, vector<32x2xf32>
    tpu.vector_store %arg8[%c0_5, %c0_6], %5 {strides = array<i32>} : memref<32x2xf32, #tpu.memory_space<vmem>>, vector<32x2xf32>,
    %c0_7 = arith.constant 0 : index
    %c0_8 = arith.constant 0 : index
    %7 = vector.load %arg4[%c0_7, %c0_8] : memref<2x2xf32, #tpu.memory_space<vmem>>, vector<2x2xf32>
    %cst_9 = arith.constant dense<0.000000e+00> : vector<32x2xf32>
    %8 = tpu.matmul %0, %7, %cst_9 {dimension_numbers = #tpu.dot_dimension_numbers<[1], [0], [0], [1], [0, 0, 1, 1], [], []>} : vector<32x2xf32>, vector<2x2xf32>, vector<32x2xf32> -> vector<32x2xf32>
    %c0_10 = arith.constant 0 : index
    %c0_11 = arith.constant 0 : index
    %9 = vector.load %arg5[%c0_10, %c0_11] : memref<1x2xf32, #tpu.memory_space<vmem>>, vector<1x2xf32>
    %10 = vector.broadcast %9 : vector<1x2xf32> to vector<32x2xf32>
    %11 = arith.addf %8, %10 : vector<32x2xf32>
    %c0_12 = arith.constant 0 : index
    %c0_13 = arith.constant 0 : index
    %12 = vector.load %arg9[%c0_12, %c0_13] : memref<32x2xf32, #tpu.memory_space<vmem>>, vector<32x2xf32>
    tpu.vector_store %arg9[%c0_12, %c0_13], %11 {strides = array<i32>} : memref<32x2xf32, #tpu.memory_space<vmem>>, vector<32x2xf32>,
    %c0_14 = arith.constant 0 : index
    %c0_15 = arith.constant 0 : index
    %13 = vector.load %arg6[%c0_14, %c0_15] : memref<2x2xf32, #tpu.memory_space<vmem>>, vector<2x2xf32>
    %cst_16 = arith.constant dense<0.000000e+00> : vector<32x2xf32>
    %14 = tpu.matmul %0, %13, %cst_16 {dimension_numbers = #tpu.dot_dimension_numbers<[1], [0], [0], [1], [0, 0, 1, 1], [], []>} : vector<32x2xf32>, vector<2x2xf32>, vector<32x2xf32> -> vector<32x2xf32>
    %c0_17 = arith.constant 0 : index
    %c0_18 = arith.constant 0 : index
    %15 = vector.load %arg7[%c0_17, %c0_18] : memref<1x2xf32, #tpu.memory_space<vmem>>, vector<1x2xf32>
    %16 = vector.broadcast %15 : vector<1x2xf32> to vector<32x2xf32>
    %17 = arith.addf %14, %16 : vector<32x2xf32>
    %c0_19 = arith.constant 0 : index
    %c0_20 = arith.constant 0 : index
    %18 = vector.load %arg10[%c0_19, %c0_20] : memref<32x2xf32, #tpu.memory_space<vmem>>, vector<32x2xf32>
    tpu.vector_store %arg10[%c0_19, %c0_20], %17 {strides = array<i32>} : memref<32x2xf32, #tpu.memory_space<vmem>>, vector<32x2xf32>,
    return
  }
  func.func @transform_0(%arg0: i32) -> (i32, i32) {
    %c0_i32 = arith.constant 0 : i32
    %c0_i32_0 = arith.constant 0 : i32
    return %arg0, %c0_i32 : i32, i32
  }
  func.func @transform_1(%arg0: i32) -> (i32, i32) {
    %c0_i32 = arith.constant 0 : i32
    %c0_i32_0 = arith.constant 0 : i32
    %c0_i32_1 = arith.constant 0 : i32
    return %c0_i32, %c0_i32_0 : i32, i32
  }
  func.func @transform_2(%arg0: i32) -> (i32, i32) {
    %c0_i32 = arith.constant 0 : i32
    %c0_i32_0 = arith.constant 0 : i32
    %c0_i32_1 = arith.constant 0 : i32
    return %c0_i32, %c0_i32_0 : i32, i32
  }
  func.func @transform_3(%arg0: i32) -> (i32, i32) {
    %c0_i32 = arith.constant 0 : i32
    %c0_i32_0 = arith.constant 0 : i32
    %c0_i32_1 = arith.constant 0 : i32
    return %c0_i32, %c0_i32_0 : i32, i32
  }
  func.func @transform_4(%arg0: i32) -> (i32, i32) {
    %c0_i32 = arith.constant 0 : i32
    %c0_i32_0 = arith.constant 0 : i32
    %c0_i32_1 = arith.constant 0 : i32
    return %c0_i32, %c0_i32_0 : i32, i32
  }
  func.func @transform_5(%arg0: i32) -> (i32, i32) {
    %c0_i32 = arith.constant 0 : i32
    %c0_i32_0 = arith.constant 0 : i32
    %c0_i32_1 = arith.constant 0 : i32
    return %c0_i32, %c0_i32_0 : i32, i32
  }
  func.func @transform_6(%arg0: i32) -> (i32, i32) {
    %c0_i32 = arith.constant 0 : i32
    %c0_i32_0 = arith.constant 0 : i32
    %c0_i32_1 = arith.constant 0 : i32
    return %c0_i32, %c0_i32_0 : i32, i32
  }
  func.func @transform_7(%arg0: i32) -> (i32, i32) {
    %c0_i32 = arith.constant 0 : i32
    %c0_i32_0 = arith.constant 0 : i32
    return %arg0, %c0_i32 : i32, i32
  }
  func.func @transform_8(%arg0: i32) -> (i32, i32) {
    %c0_i32 = arith.constant 0 : i32
    %c0_i32_0 = arith.constant 0 : i32
    return %arg0, %c0_i32 : i32, i32
  }
  func.func @transform_9(%arg0: i32) -> (i32, i32) {
    %c0_i32 = arith.constant 0 : i32
    %c0_i32_0 = arith.constant 0 : i32
    return %arg0, %c0_i32 : i32, i32
  }
}

</mosaic_0001>

<bundles_post_ra>
// kernel: tpu_custom_call.1
= control target key start
LH: loop header
LB: loop body
LE: loop exit
PB: predicated region body
PF: predicated region fallthrough
CT: control target
= control target key end

     0   :  { %vm54_vm0 = vcmask 1041408   ;;  %vm41_vm1 = vcmask 15360   ;;  %s566_s1 = inlined_call_operand.vmem [shape: f32[2,2], index: 1, kind: input, shape index: {}]   ;;  %s567_s0 = inlined_call_operand.vmem [shape: f32[32,2], index: 0, kind: input, shape index: {}]   ;;  %s568_s3 = inlined_call_operand.vmem [shape: f32[2,2], index: 3, kind: input, shape index: {}]   ;;  %s569_s5 = inlined_call_operand.vmem [shape: f32[2,2], index: 5, kind: input, shape index: {}]   ;;  %s570_s2 = inlined_call_operand.vmem [shape: f32[1,2], index: 2, kind: input, shape index: {}]   ;;  %s571_s4 = inlined_call_operand.vmem [shape: f32[1,2], index: 4, kind: input, shape index: {}]   ;;  %s572_s6 = inlined_call_operand.vmem [shape: f32[1,2], index: 6, kind: input, shape index: {}]   ;;  %s573_s7 = inlined_call_operand.vmem [shape: f32[32,2], index: 7, kind: output, shape index: {0}]   ;;  %s574_s8 = inlined_call_operand.vmem [shape: f32[32,2], index: 8, kind: output, shape index: {1}]   ;;  %s575_s9 = inlined_call_operand.vmem [shape: f32[32,2], index: 9, kind: output, shape index: {2}]  }
   0x1   :  { %v33_v0 = vld [vmem:[%s566_s1] sm:$0x3]  ;;  %v31_v2 = vld [vmem:[%s567_s0 + $0x10] sm:$0xff]  ;;  %v30_v3 = vld [vmem:[%s567_s0 + $0x8] sm:$0xff] }
   0x2   :  { %v29_v1 = vld [vmem:[%s567_s0] sm:$0xff]  ;;  %392 = vmatprep.subr.msk.mxu0 %vm54_vm0, %v33_v0  ;;  %416 = vmatprep.subr.msk.mxu1 %vm54_vm0, %v33_v0  ;;  %v32_v4 = vld [vmem:[%s567_s0 + $0x18] sm:$0xff] }
   0x3   :  { %393 = vmatpush3.msk.msra.mxu0 %vm54_vm0, %v33_v0  ;;  %417 = vmatpush3.msk.msra.mxu1 %vm54_vm0, %v33_v0  ;;  %v147_v5 = vld [vmem:[%s568_s3] sm:$0x3] }
   0x4   :  { %v247_v6 = vld [vmem:[%s569_s5] sm:$0x3]  ;;  %394 = vmatprep.mubr.msk.f32.mxu0 %vm41_vm1, %v29_v1  ;;  %397 = vmatprep.mubr.msk.f32.mxu1 %vm41_vm1, %v31_v2 }
   0x5   :  { %395 = vmatmul.mubr.msk.f32.vlgmr.msra.gmra.mxu0 %vm41_vm1, %v30_v3  ;;  %398 = vmatmul.mubr.msk.f32.vlgmr.msra.gmra.mxu1 %vm41_vm1, %v32_v4  ;;  %v359_v7 = vld [vmem:[%s570_s2] ss:$0 sm:$0xff] }
   0x6   :  { %400 = vmatprep.subr.msk.mxu1 %vm54_vm0, %v147_v5  ;;  %408 = vmatprep.subr.msk.mxu0 %vm54_vm0, %v247_v6  ;;  %v365_v14 = vld [vmem:[%s571_s4] ss:$0 sm:$0xff] }
   0x7   :  { %401 = vmatpush3.msk.msra.mxu1 %vm54_vm0, %v147_v5  ;;  %409 = vmatpush3.msk.msra.mxu0 %vm54_vm0, %v247_v6  ;;  %v371_v15 = vld [vmem:[%s572_s6] ss:$0 sm:$0xff] }
   0x8   :  { %402 = vmatprep.mubr.msk.f32.mxu1 %vm41_vm1, %v29_v1  ;;  %410 = vmatprep.mubr.msk.f32.mxu0 %vm41_vm1, %v29_v1 }
   0x9   :  { %403 = vmatmul.mubr.msk.f32.vlgmr.msra.gmra.mxu1 %vm41_vm1, %v30_v3  ;;  %411 = vmatmul.mubr.msk.f32.vlgmr.msra.gmra.mxu0 %vm41_vm1, %v30_v3 }
   0xa   :  { %405 = vmatprep.mubr.msk.f32.mxu1 %vm41_vm1, %v31_v2  ;;  %413 = vmatprep.mubr.msk.f32.mxu0 %vm41_vm1, %v31_v2 }
   0xd   :  { %406 = vmatmul.mubr.msk.f32.gmra.mxu1 %vm41_vm1, %v32_v4  ;;  %414 = vmatmul.mubr.msk.f32.gmra.mxu0 %vm41_vm1, %v32_v4 }
  0xc5   :  { %v396_v8 = vpop.f32.mrf.mxu0  ;;  %v399_v9 = vpop.f32.mrf.mxu1 }
  0xc6   :  { %v130_v10 = vadd.f32 %v396_v8, %v359_v7  ;;  %v140_v11 = vadd.f32 %v399_v9, %v359_v7 }
  0xc7   :  { %v124_v12 = vpop.f32.mrf.mxu0  ;;  %v134_v13 = vpop.f32.mrf.mxu1 }
  0xc8   :  { %144 = vst.msk [vmem:[%s573_s7 + $0x8] sm:$0xff] %vm41_vm1, %v130_v10  ;;  %146 = vst.msk [vmem:[%s573_s7 + $0x18] sm:$0xff] %vm41_vm1, %v140_v11  ;;  %v125_v16 = vadd.f32 %v359_v7, %v124_v12  ;;  %v135_v17 = vadd.f32 %v359_v7, %v134_v13 }
  0xc9   :  { %v404_v18 = vpop.f32.mrf.mxu1  ;;  %v412_v19 = vpop.f32.mrf.mxu0 }
  0xca   :  { %143 = vst.msk [vmem:[%s573_s7] sm:$0xff] %vm41_vm1, %v125_v16  ;;  %145 = vst.msk [vmem:[%s573_s7 + $0x10] sm:$0xff] %vm41_vm1, %v135_v17  ;;  %v230_v20 = vadd.f32 %v404_v18, %v365_v14  ;;  %v330_v21 = vadd.f32 %v412_v19, %v371_v15 }
  0xcb   :  { %v224_v22 = vpop.f32.mrf.mxu1  ;;  %v324_v23 = vpop.f32.mrf.mxu0 }
  0xcc   :  { %244 = vst.msk [vmem:[%s574_s8 + $0x8] sm:$0xff] %vm41_vm1, %v230_v20  ;;  %344 = vst.msk [vmem:[%s575_s9 + $0x8] sm:$0xff] %vm41_vm1, %v330_v21  ;;  %v225_v24 = vadd.f32 %v365_v14, %v224_v22  ;;  %v325_v25 = vadd.f32 %v371_v15, %v324_v23 }
  0xcd   :  { %v407_v26 = vpop.f32.mrf.mxu1  ;;  %v415_v27 = vpop.f32.mrf.mxu0 }
  0xce   :  { %243 = vst.msk [vmem:[%s574_s8] sm:$0xff] %vm41_vm1, %v225_v24  ;;  %343 = vst.msk [vmem:[%s575_s9] sm:$0xff] %vm41_vm1, %v325_v25  ;;  %v240_v28 = vadd.f32 %v407_v26, %v365_v14  ;;  %v340_v29 = vadd.f32 %v415_v27, %v371_v15 }
  0xcf   :  { %v234_v30 = vpop.f32.mrf.mxu1  ;;  %v334_v31 = vpop.f32.mrf.mxu0 }
  0xd0   :  { %246 = vst.msk [vmem:[%s574_s8 + $0x18] sm:$0xff] %vm41_vm1, %v240_v28  ;;  %346 = vst.msk [vmem:[%s575_s9 + $0x18] sm:$0xff] %vm41_vm1, %v340_v29  ;;  %v235_v32 = vadd.f32 %v365_v14, %v234_v30  ;;  %v335_v33 = vadd.f32 %v371_v15, %v334_v31 }
  0xd2   :  { %245 = vst.msk [vmem:[%s574_s8 + $0x10] sm:$0xff] %vm41_vm1, %v235_v32  ;;  %345 = vst.msk [vmem:[%s575_s9 + $0x10] sm:$0xff] %vm41_vm1, %v335_v33 }

</bundles_post_ra>
